<compile_context>
chip_gen: v7x
topology: tpu7x:2x2x1
jax: 0.10.0
libtpu: 0.0.40
codegen_flags: <defaults>
</compile_context>

<pallas_src>
import functools

import jax
import jax.numpy as jnp
from jax.experimental import pallas as pl
from jax.experimental.pallas import tpu as pltpu


# ------------------------------ kernel -------------------------------------- #

def scale_predictor_kernel(feat_ref, w_ref, b_ref, out_ref, *,
                           scaling_factor: float, bias: float):
    """Fused Linear(in_dim -> 1) + affine + ReLU + 1e-12 (VPU/XLU only)."""
    x = feat_ref[...]                                   # (B, D)  VMEM
    w = w_ref[...]                                      # (1, D)  VMEM, broadcasts over rows
    # VPU multiply + XLU lane reduce instead of an MXU (B,D)@(D,1) dot.
    s = jnp.sum(x * w, axis=-1, keepdims=True)          # (B, 1) f32
    # Fold the Linear bias (SMEM scalar) into the affine epilogue on scalar ALU.
    fused_bias = b_ref[0, 0] * scaling_factor + bias
    s = s * scaling_factor + fused_bias                  # one VPU FMA
    out_ref[...] = jnp.maximum(s, 0.0) + 1e-12


# ------------------------------ wrapper ------------------------------------- #

def scale_predictor(feat, w, b, *, scaling_factor: float, bias: float):
    """feat: (B, D) f32, w: (1, D) f32 (PyTorch-native layout), b: (1, 1) f32."""
    B, D = feat.shape
    assert w.shape == (1, D) and b.shape == (1, 1)

    kernel = functools.partial(
        scale_predictor_kernel, scaling_factor=scaling_factor, bias=bias)

    vmem_spec = pl.BlockSpec(memory_space=pltpu.MemorySpace.VMEM)
    smem_spec = pl.BlockSpec(memory_space=pltpu.MemorySpace.SMEM)

    return pl.pallas_call(
        kernel,
        out_shape=jax.ShapeDtypeStruct((B, 1), jnp.float32),
        in_specs=[vmem_spec, vmem_spec, smem_spec],
        out_specs=vmem_spec,
        cost_estimate=pl.CostEstimate(
            flops=2 * B * D,
            transcendentals=0,
            bytes_accessed=(B * D + D + B + 1) * 4,
        ),
    )(feat, w, b)


# ------------------------- plain-JAX reference ------------------------------ #

def scale_predictor_ref(feat, w, b, *, scaling_factor, bias):
    s = feat @ w.T + b                 # Linear(in_dim -> 1), PyTorch (1, D) weight
    s = s * scaling_factor + bias
    return jnp.maximum(s, 0.0) + 1e-12


# -------------------------------- main --------------------------------------- #

if __name__ == "__main__":
    B = 8            # batch
    D = 32           # input_dim
    BIAS = 0.7       # ScalePredictor bias hyperparameter
    SCALING = 0.05   # ScalePredictor scaling_factor hyperparameter

    root = jax.random.PRNGKey(0)
    k_feat, k_w, k_b = jax.random.split(root, 3)

    feat = jax.random.normal(k_feat, (B, D), dtype=jnp.float32)
    # Linear(in=D, out=1): weight kept in PyTorch-native (1, D) layout.
    w = jax.random.normal(k_w, (1, D), dtype=jnp.float32) * 0.05
    b = jax.random.normal(k_b, (1, 1), dtype=jnp.float32) * 0.05

    fwd = jax.jit(functools.partial(scale_predictor,
                                    scaling_factor=SCALING, bias=BIAS))
    out = fwd(feat, w, b)
    jax.block_until_ready(out)

    ref = scale_predictor_ref(feat, w, b, scaling_factor=SCALING, bias=BIAS)

    assert out.shape == (B, 1)
    assert bool(jnp.all(jnp.isfinite(out)))
    assert bool(jnp.all(out >= 1e-12))
    assert bool(jnp.allclose(out, ref, rtol=1e-5, atol=1e-6))

    print("KERNEL_OK")
</pallas_src>

<mosaic_0001>
module attributes {stable_mosaic.version = 11 : i64} {
  func.func @scale_predictor_kernel(%arg0: memref<8x32xf32, #tpu.memory_space<vmem>>, %arg1: memref<1x32xf32, #tpu.memory_space<vmem>>, %arg2: memref<1x1xf32, #tpu.memory_space<smem>>, %arg3: memref<8x1xf32, #tpu.memory_space<vmem>>) attributes {dimension_semantics = [], scalar_prefetch = 0 : i64, scratch_operands = 0 : i64, tpu.core_type = #tpu.core_type<tc>} {
    %c0 = arith.constant 0 : index
    %c0_0 = arith.constant 0 : index
    %0 = vector.load %arg0[%c0, %c0_0] : memref<8x32xf32, #tpu.memory_space<vmem>>, vector<8x32xf32>
    %c0_1 = arith.constant 0 : index
    %c0_2 = arith.constant 0 : index
    %1 = vector.load %arg1[%c0_1, %c0_2] : memref<1x32xf32, #tpu.memory_space<vmem>>, vector<1x32xf32>
    %2 = vector.broadcast %1 : vector<1x32xf32> to vector<8x32xf32>
    %3 = arith.mulf %0, %2 : vector<8x32xf32>
    %cst = arith.constant dense<0.000000e+00> : vector<8xf32>
    %4 = vector.multi_reduction <add>, %3, %cst [1] : vector<8x32xf32> to vector<8xf32>
    %5 = vector.shape_cast %4 : vector<8xf32> to vector<8x1xf32>
    %c0_3 = arith.constant 0 : index
    %c0_4 = arith.constant 0 : index
    %6 = memref.load %arg2[%c0_3, %c0_4] : memref<1x1xf32, #tpu.memory_space<smem>>
    %cst_5 = arith.constant 5.000000e-02 : f32
    %7 = arith.mulf %6, %cst_5 : f32
    %cst_6 = arith.constant 0.699999988 : f32
    %8 = arith.addf %7, %cst_6 : f32
    %cst_7 = arith.constant 5.000000e-02 : f32
    %9 = vector.broadcast %cst_7 : f32 to vector<8x1xf32>
    %10 = arith.mulf %5, %9 : vector<8x1xf32>
    %11 = vector.broadcast %8 : f32 to vector<8x1xf32>
    %12 = arith.addf %10, %11 : vector<8x1xf32>
    %cst_8 = arith.constant 0.000000e+00 : f32
    %13 = vector.broadcast %cst_8 : f32 to vector<8x1xf32>
    %14 = arith.maximumf %12, %13 : vector<8x1xf32>
    %cst_9 = arith.constant 9.99999996E-13 : f32
    %15 = vector.broadcast %cst_9 : f32 to vector<8x1xf32>
    %16 = arith.addf %14, %15 : vector<8x1xf32>
    %c0_10 = arith.constant 0 : index
    %c0_11 = arith.constant 0 : index
    %17 = vector.load %arg3[%c0_10, %c0_11] : memref<8x1xf32, #tpu.memory_space<vmem>>, vector<8x1xf32>
    tpu.vector_store %arg3[%c0_10, %c0_11], %16 {strides = array<i32>} : memref<8x1xf32, #tpu.memory_space<vmem>>, vector<8x1xf32>,
    return
  }
}

</mosaic_0001>

<bundles_post_ra>
// kernel: scale_predictor.1
= control target key start
LH: loop header
LB: loop body
LE: loop exit
PB: predicated region body
PF: predicated region fallthrough
CT: control target
= control target key end

     0   :  { %9 = vsyncpa [#allocation4], 0  ;;  %s81_s12 = smov [#allocation3]   ;;  %s123_s0 = inlined_call_operand.hbm [shape: f32[8,32], index: 0, kind: input, shape index: {}]   ;;  %s124_s1 = inlined_call_operand.vmem [shape: f32[1,32], index: 1, kind: input, shape index: {}]   ;;  %s125_s2 = inlined_call_operand.<no memory space> [shape: f32[1,1], index: 2, kind: input, shape index: {}]   ;;  %s126_s3 = inlined_call_operand.vmem [shape: f32[8,1], index: 3, kind: output, shape index: {}]  }
   0x1   :  { %s16_s13 = sshll.u32 %s81_s12, 4  ;;  %s57_s16 = scalar_lea.hbm %s123_s0, 128  ;;  %s17_s13 = int_to_ptr.vmem [resolvable:$true] %s16_s13 }
   0x2   :  { %p58_p0 = scmp.ne.s32.totalorder %s123_s0, %s57_s16  ;;  %p61_p1 = scmp.lt.u32.totalorder %s57_s16, %s123_s0 }
   0x4   :  { %p63_p2 = pnand %p61_p1, %p58_p0 }
   0x6   :  { %66 = shalt.err (!%p63_p2)
}
   0x7   :  { %s67_s21 = scalar_lea.vmem %s17_s13, 128  ;;  %p72_p4 = scmp.lt.s32.totalorder %s17_s13, %s17_s13 }
   0x8   :  { %p68_p3 = scmp.ne.s32.totalorder %s17_s13, %s67_s21  ;;  %p73_p5 = scmp.lt.s32.totalorder %s67_s21, %s67_s21 }
   0xa   :  { %p74_p6 = por %p73_p5, %p72_p4 }
   0xc   :  { %p75_p7 = pnand %p74_p6, %p68_p3 }
   0xe   :  { %78 = shalt.err (!%p75_p7)
}
   0xf   :  { %19 = dma.hbm_to_vmem [thread:$0]  %s123_s0, 128, %s17_s13, [#allocation4]  }
  0x10   :  { %79 = dma.done.wait [#allocation4], 128  }
  0x11   :  { %80 = vsyncadd [#allocation4], 4294967168  ;;  %v27_v0 = vld [vmem:[#allocation3] sm:$0xff]  ;;  %vm36_vm0 = vcmask 261120   ;;  %s41_s28 = smul.f32 0.05, %s125_s2 }
  0x12   :  { %v55_v1 = vld [vmem:[%s124_s1] ss:$0 sm:$0xff]  ;;  %vm48_vm1 = vcmask 7168  }
  0x13   :  { %v35_v2 = vmul.f32 %v55_v1, %v27_v0  ;;  %s42_s29 = sadd.f32 0.7, %s41_s28 }
  0x15   :  { %v37_v3 = vsel %vm36_vm0, %v35_v2, 0.0  ;;  %v44_v5 = vstv %s42_s29 }
  0x16   :  { %38 = vadd.xlane.f32.xlu0 %v37_v3 }
  0xa3   :  { %v39_v4 = vpop.xlane.xlu0 %38 }
  0xa4   :  { %v43_v6 = vmul.f32 0.05, %v39_v4 }
  0xa6   :  { %v45_v7 = vadd.f32 %v44_v5, %v43_v6 }
  0xa8   :  { %v46_v8 = vmax.f32 %v45_v7, 0.0 }
  0xaa   :  { %v47_v9 = vadd.f32 1e-12, %v46_v8 }
  0xac   :  { %49 = vst.msk [vmem:[%s126_s3] sm:$0xff] %vm48_vm1, %v47_v9 }
  0xad   :  { %54 = vsyncpa [#allocation4], 1 }

</bundles_post_ra>
